<compile_context>
chip_gen: v7x
topology: tpu7x:2x2x1
jax: 0.10.0
libtpu: 0.0.40
codegen_flags: <defaults>
</compile_context>

<pallas_src>
import functools

import jax
import jax.numpy as jnp
from jax import lax
from jax.experimental import pallas as pl
from jax.experimental.pallas import tpu as pltpu

_LANE = 128
_MAX_CHUNK_ROWS = 8192     # 8192 * 128 = 1 MiB of int8 labels per grid step


def _mctrans_aux_loss_kernel(x_ref, lab_ref, out_ref, acc_ref, *,
                             num_classes, group_rows, num_words, use_sigmoid):
    """One grid step = one (chunk_rows, 128) label chunk of one sample.

    x_ref  : (N, C)               logits, VMEM-resident (constant index map)
    lab_ref: (chunk_rows, 128)    label chunk for sample b (narrow int dtype)
    out_ref: (1, 1, 1)            per-sample loss, written on the last chunk
    acc_ref: (W, G, 128) int32    class-presence bitmask accumulator (scratch)
    """
    b = pl.program_id(0)
    p = pl.program_id(1)
    n_chunks = pl.num_programs(1)

    @pl.when(p == 0)
    def _init():
        acc_ref[...] = jnp.zeros_like(acc_ref)

    chunk_rows = lab_ref.shape[0]
    n_groups = chunk_rows // group_rows

    def _or_into_acc(lab_block):
        lab = lab_block.astype(jnp.int32)
        # Padding (-1 / 255) and out-of-range "ignore" labels contribute
        # nothing.  TODO(synk): torch's scatter_-based one_hot would raise on
        # such labels instead of ignoring them.
        valid = (lab >= 0) & (lab < num_classes)
        lab_s = jnp.where(valid, lab, 0)
        bit = jnp.left_shift(jnp.int32(1), lab_s & 31)
        if num_words == 1:
            acc_ref[0] = acc_ref[0] | jnp.where(valid, bit, 0)
        else:
            word = jnp.right_shift(lab_s, 5)
            for w in range(num_words):
                acc_ref[w] = acc_ref[w] | jnp.where(valid & (word == w), bit, 0)

    if n_groups == 1:
        _or_into_acc(lab_ref[...])
    else:
        def _body(i, carry):
            start = pl.multiple_of(i * group_rows, group_rows)
            _or_into_acc(lab_ref[pl.ds(start, group_rows), :])
            return carry
        lax.fori_loop(0, n_groups, _body, 0, unroll=8)

    @pl.when(p == n_chunks - 1)
    def _finalize():
        acc = acc_ref[...]                                    # (W, G, 128)

        # Select this sample's logits row (no dynamic slicing needed).
        x_all = x_ref[...].astype(jnp.float32)                # (N, C)
        row_ids = lax.broadcasted_iota(jnp.int32, x_all.shape, 0)
        x = jnp.sum(jnp.where(row_ids == b, x_all, 0.0),
                    axis=0, keepdims=True)                    # (1, C)

        # Expand the accumulated bitmask into the (1, C) multi-hot target.
        # This per-class loop touches only the tiny VMEM slab, once per
        # sample (never the pixel stream).
        c_iota = lax.broadcasted_iota(jnp.int32, (1, num_classes), 1)
        y = jnp.zeros((1, num_classes), jnp.float32)
        for c in range(num_classes):
            w, bitpos = divmod(c, 32)
            plane = jnp.right_shift(acc[w], bitpos) & 1       # (G, 128)
            m = jnp.max(jnp.max(plane, axis=1, keepdims=True),
                        axis=0, keepdims=True)                # (1, 1)
            present = (m > 0).astype(jnp.float32)
            y = y + jnp.where(c_iota == c, present, 0.0)

        if use_sigmoid:
            # F.binary_cross_entropy_with_logits, elementwise (1, C).
            ax = jnp.abs(x)
            t = jnp.exp(-ax)
            softplus = jnp.where(ax > 20.0, t, jnp.log(1.0 + t))  # ~= log1p
            l = jnp.maximum(x, 0.0) - x * y + softplus
        else:
            # Cross entropy with probability (multi-hot) targets.
            m = jnp.max(x, axis=-1, keepdims=True)
            logz = jnp.log(jnp.sum(jnp.exp(x - m), axis=-1, keepdims=True)) + m
            l = -(y * (x - logz))
        sample_loss = jnp.sum(l, axis=1, keepdims=True)       # (1, 1)
        out_ref[...] = sample_loss.reshape(1, 1, 1)


class MCTransAuxLoss:
    """Pallas TPU implementation of the mctrans MCTransAuxLoss forward."""

    def __init__(self, sigmoid=False, softmax=False, reduction='mean',
                 loss_weight=1.0):
        assert not (sigmoid and softmax)
        self.use_sigmoid = sigmoid
        self.reduction = reduction
        self.loss_weight = float(loss_weight)

    def __call__(self, cls_score, label, weight=None, avg_factor=None,
                 reduction_override=None):
        assert reduction_override in (None, 'none', 'mean', 'sum')
        reduction = reduction_override if reduction_override else self.reduction
        # TODO(synk): 'none' reduction, per-sample weight and avg_factor paths
        # are not kernelized; only weight=None / avg_factor=None 'mean'/'sum'.
        assert weight is None and avg_factor is None
        assert reduction in ('mean', 'sum')

        n, c = cls_score.shape
        lab = label.reshape(n, -1)              # keep the narrow label dtype
        p_total = lab.shape[1]

        # Pixel tiling: lane-dense rows of 128, chunked along a reduction axis.
        rows = -(-p_total // _LANE)
        if rows <= _MAX_CHUNK_ROWS:
            n_chunks = 1
            chunk_rows = rows if rows <= 32 else (-(-rows // 32)) * 32
        else:
            chunk_rows = _MAX_CHUNK_ROWS
            n_chunks = -(-rows // chunk_rows)
        pad = chunk_rows * n_chunks * _LANE - p_total
        if pad:
            if jnp.issubdtype(lab.dtype, jnp.unsignedinteger):
                fill = jnp.iinfo(lab.dtype).max   # masked in-kernel (>= C)
            else:
                fill = -1                          # masked in-kernel (< 0)
            lab = jnp.pad(lab, ((0, 0), (0, pad)), constant_values=fill)
        lab = lab.reshape(n, n_chunks, chunk_rows, _LANE)

        if chunk_rows % 32 == 0:
            group_rows = 32
        elif chunk_rows % 8 == 0:
            group_rows = 8
        else:
            group_rows = chunk_rows
        num_words = (c + 31) // 32

        kernel = functools.partial(
            _mctrans_aux_loss_kernel,
            num_classes=c, group_rows=group_rows, num_words=num_words,
            use_sigmoid=self.use_sigmoid)

        per_sample = pl.pallas_call(
            kernel,
            grid=(n, n_chunks),
            in_specs=[
                pl.BlockSpec((n, c), lambda b, p: (0, 0)),
                pl.BlockSpec((None, None, chunk_rows, _LANE),
                             lambda b, p: (b, p, 0, 0)),
            ],
            out_specs=pl.BlockSpec((1, 1, 1), lambda b, p: (b, 0, 0)),
            out_shape=jax.ShapeDtypeStruct((n, 1, 1), jnp.float32),
            scratch_shapes=[pltpu.VMEM((num_words, group_rows, _LANE),
                                       jnp.int32)],
            compiler_params=pltpu.CompilerParams(
                dimension_semantics=("parallel", "arbitrary"),
                vmem_limit_bytes=32 * 1024 * 1024),
        )(cls_score, lab)

        total = jnp.sum(per_sample)
        if reduction == 'mean':
            denom = float(n * c) if self.use_sigmoid else float(n)
            total = total / denom
        return self.loss_weight * total


def _reference_loss(cls_score, label, mode, loss_weight=1.0):
    """Pure-JAX reference mirroring the PyTorch forward (for validation)."""
    n, c = cls_score.shape
    lab = label.reshape(n, -1).astype(jnp.int32)
    y = (lab[:, None, :] == jnp.arange(c)[None, :, None]).any(-1)
    y = y.astype(jnp.float32)
    x = cls_score.astype(jnp.float32)
    if mode == 'sigmoid':
        loss = jnp.maximum(x, 0.0) - x * y + jnp.log1p(jnp.exp(-jnp.abs(x)))
        return loss_weight * loss.mean()
    logp = jax.nn.log_softmax(x, axis=-1)
    return loss_weight * (-(y * logp).sum(-1)).mean()


if __name__ == "__main__":
    key = jax.random.PRNGKey(0)
    k1, k2, k3 = jax.random.split(key, 3)

    N, C, H, W = 2, 4, 16, 16
    cls_score = jax.random.normal(k1, (N, C), dtype=jnp.float32)
    # Labels stored in their natural narrow dtype (int8); only classes 0..2
    # appear so the multi-hot has both present and absent classes.
    label = jax.random.randint(k2, (N, 1, H, W), 0, 3,
                               dtype=jnp.int32).astype(jnp.int8)

    out_sig = MCTransAuxLoss(sigmoid=True)(cls_score, label)
    out_sig = jax.block_until_ready(out_sig)
    ref_sig = _reference_loss(cls_score, label, 'sigmoid')
    assert jnp.allclose(out_sig, ref_sig, atol=1e-5, rtol=1e-5), (out_sig, ref_sig)

    out_sm = MCTransAuxLoss(softmax=True, loss_weight=0.5)(cls_score, label)
    out_sm = jax.block_until_ready(out_sm)
    ref_sm = _reference_loss(cls_score, label, 'softmax', loss_weight=0.5)
    assert jnp.allclose(out_sm, ref_sm, atol=1e-5, rtol=1e-5), (out_sm, ref_sm)

    # Non-multiple-of-128 spatial size + ignore pixels: exercises padding and
    # the in-kernel invalid-label masking.
    H2 = W2 = 10
    label2 = jax.random.randint(k3, (N, 1, H2, W2), 0, 2,
                                dtype=jnp.int32).astype(jnp.int8)
    label2 = label2.at[:, :, 0, 0].set(-1)   # "ignore" pixels
    out_pad = MCTransAuxLoss(sigmoid=True)(cls_score, label2)
    out_pad = jax.block_until_ready(out_pad)
    ref_pad = _reference_loss(cls_score, label2, 'sigmoid')
    assert jnp.allclose(out_pad, ref_pad, atol=1e-5, rtol=1e-5), (out_pad, ref_pad)

    print("KERNEL_OK")
</pallas_src>

<mosaic_0001>
module attributes {stable_mosaic.version = 11 : i64} {
  func.func @_mctrans_aux_loss_kernel(%arg0: i32, %arg1: i32, %arg2: memref<2x4xf32, #tpu.memory_space<vmem>>, %arg3: memref<1x1x2x128xi8, #tpu.memory_space<vmem>>, %arg4: memref<1x1x1xf32, #tpu.memory_space<vmem>>, %arg5: memref<1x2x128xi32, #tpu.memory_space<vmem>>) attributes {dimension_semantics = [#tpu.dimension_semantics<parallel>, #tpu.dimension_semantics<arbitrary>], iteration_bounds = array<i64: 2, 1>, scalar_prefetch = 0 : i64, scratch_operands = 1 : i64, tpu.core_type = #tpu.core_type<tc>, window_params = [{pipeline_mode = #tpu.pipeline_mode<synchronous>, transform_indices = @transform_0, window_bounds = array<i64: 2, 4>}, {transform_indices = @transform_1, window_bounds = array<i64: 1, 1, 2, 128>}, {transform_indices = @transform_2, window_bounds = array<i64: 1, 1, 1>}]} {
    %c0_i32 = arith.constant 0 : i32
    %0 = arith.cmpi eq, %arg1, %c0_i32 : i32
    %1 = arith.extui %0 : i1 to i32
    %c0_i32_0 = arith.constant 0 : i32
    %2 = arith.cmpi ne, %1, %c0_i32_0 : i32
    scf.if %2 {
      %c0_i32_15 = arith.constant 0 : i32
      %28 = vector.broadcast %c0_i32_15 : i32 to vector<1x2x128xi32>
      %c0_16 = arith.constant 0 : index
      %c0_17 = arith.constant 0 : index
      %c0_18 = arith.constant 0 : index
      %29 = vector.load %arg5[%c0_16, %c0_17, %c0_18] : memref<1x2x128xi32, #tpu.memory_space<vmem>>, vector<1x2x128xi32>
      tpu.vector_store %arg5[%c0_16, %c0_17, %c0_18], %28 {strides = array<i32>} : memref<1x2x128xi32, #tpu.memory_space<vmem>>, vector<1x2x128xi32>,
    } else {
    }
    %c0 = arith.constant 0 : index
    %c0_1 = arith.constant 0 : index
    %c0_2 = arith.constant 0 : index
    %c0_3 = arith.constant 0 : index
    %3 = vector.load %arg3[%c0, %c0_1, %c0_2, %c0_3] : memref<1x1x2x128xi8, #tpu.memory_space<vmem>>, vector<1x1x2x128xi8>
    %4 = vector.shape_cast %3 : vector<1x1x2x128xi8> to vector<2x128xi8>
    %5 = arith.extsi %4 : vector<2x128xi8> to vector<2x128xi32>
    %c0_i32_4 = arith.constant 0 : i32
    %6 = vector.broadcast %c0_i32_4 : i32 to vector<2x128xi32>
    %7 = arith.cmpi sge, %5, %6 : vector<2x128xi32>
    %c4_i32 = arith.constant 4 : i32
    %8 = vector.broadcast %c4_i32 : i32 to vector<2x128xi32>
    %9 = arith.cmpi slt, %5, %8 : vector<2x128xi32>
    %10 = arith.andi %7, %9 : vector<2x128xi1>
    %c0_i32_5 = arith.constant 0 : i32
    %11 = vector.broadcast %c0_i32_5 : i32 to vector<2x128xi32>
    %12 = arith.select %10, %5, %11 : vector<2x128xi1>, vector<2x128xi32>
    %c31_i32 = arith.constant 31 : i32
    %13 = vector.broadcast %c31_i32 : i32 to vector<2x128xi32>
    %14 = arith.andi %12, %13 : vector<2x128xi32>
    %c1_i32 = arith.constant 1 : i32
    %15 = vector.broadcast %c1_i32 : i32 to vector<2x128xi32>
    %16 = arith.shli %15, %14 : vector<2x128xi32>
    %c0_6 = arith.constant 0 : index
    %c0_7 = arith.constant 0 : index
    %c0_8 = arith.constant 0 : index
    %17 = vector.load %arg5[%c0_6, %c0_7, %c0_8] : memref<1x2x128xi32, #tpu.memory_space<vmem>>, vector<1x2x128xi32>
    %18 = vector.shape_cast %17 : vector<1x2x128xi32> to vector<2x128xi32>
    %c0_i32_9 = arith.constant 0 : i32
    %19 = vector.broadcast %c0_i32_9 : i32 to vector<2x128xi32>
    %20 = arith.select %10, %16, %19 : vector<2x128xi1>, vector<2x128xi32>
    %21 = arith.ori %18, %20 : vector<2x128xi32>
    %c0_10 = arith.constant 0 : index
    %c0_11 = arith.constant 0 : index
    %c0_12 = arith.constant 0 : index
    %22 = vector.load %arg5[%c0_10, %c0_11, %c0_12] : memref<1x2x128xi32, #tpu.memory_space<vmem>>, vector<1x2x128xi32>
    %23 = vector.shape_cast %22 : vector<1x2x128xi32> to vector<2x128xi32>
    %24 = vector.shape_cast %21 : vector<2x128xi32> to vector<1x2x128xi32>
    tpu.vector_store %arg5[%c0_10, %c0_11, %c0_12], %24 {strides = array<i32>} : memref<1x2x128xi32, #tpu.memory_space<vmem>>, vector<1x2x128xi32>,
    %c0_i32_13 = arith.constant 0 : i32
    %25 = arith.cmpi eq, %arg1, %c0_i32_13 : i32
    %26 = arith.extui %25 : i1 to i32
    %c0_i32_14 = arith.constant 0 : i32
    %27 = arith.cmpi ne, %26, %c0_i32_14 : i32
    scf.if %27 {
      %c0_15 = arith.constant 0 : index
      %c0_16 = arith.constant 0 : index
      %c0_17 = arith.constant 0 : index
      %28 = vector.load %arg5[%c0_15, %c0_16, %c0_17] : memref<1x2x128xi32, #tpu.memory_space<vmem>>, vector<1x2x128xi32>
      %c0_18 = arith.constant 0 : index
      %c0_19 = arith.constant 0 : index
      %29 = vector.load %arg2[%c0_18, %c0_19] : memref<2x4xf32, #tpu.memory_space<vmem>>, vector<2x4xf32>
      %30 = tpu.iota {dimensions = array<i32: 0>} : vector<2x4xi32>
      %31 = vector.broadcast %arg0 : i32 to vector<2x4xi32>
      %32 = arith.cmpi eq, %30, %31 : vector<2x4xi32>
      %cst = arith.constant 0.000000e+00 : f32
      %33 = vector.broadcast %cst : f32 to vector<2x4xf32>
      %34 = arith.select %32, %29, %33 : vector<2x4xi1>, vector<2x4xf32>
      %cst_20 = arith.constant dense<0.000000e+00> : vector<4xf32>
      %35 = vector.multi_reduction <add>, %34, %cst_20 [0] : vector<2x4xf32> to vector<4xf32>
      %36 = vector.shape_cast %35 : vector<4xf32> to vector<1x4xf32>
      %37 = tpu.iota {dimensions = array<i32: 1>} : vector<1x4xi32>
      %cst_21 = arith.constant 0.000000e+00 : f32
      %38 = vector.broadcast %cst_21 : f32 to vector<1x4xf32>
      %39 = vector.shape_cast %28 : vector<1x2x128xi32> to vector<2x128xi32>
      %c0_i32_22 = arith.constant 0 : i32
      %40 = vector.broadcast %c0_i32_22 : i32 to vector<2x128xi32>
      %41 = arith.shrsi %39, %40 : vector<2x128xi32>
      %c1_i32_23 = arith.constant 1 : i32
      %42 = vector.broadcast %c1_i32_23 : i32 to vector<2x128xi32>
      %43 = arith.andi %41, %42 : vector<2x128xi32>
      %cst_24 = arith.constant dense<-2147483648> : vector<2xi32>
      %44 = vector.multi_reduction <maxsi>, %43, %cst_24 [1] : vector<2x128xi32> to vector<2xi32>
      %45 = vector.shape_cast %44 : vector<2xi32> to vector<2x1xi32>
      %cst_25 = arith.constant dense<-2147483648> : vector<1xi32>
      %46 = vector.multi_reduction <maxsi>, %45, %cst_25 [0] : vector<2x1xi32> to vector<1xi32>
      %47 = vector.shape_cast %46 : vector<1xi32> to vector<1x1xi32>
      %c0_i32_26 = arith.constant 0 : i32
      %48 = vector.broadcast %c0_i32_26 : i32 to vector<1x1xi32>
      %49 = arith.cmpi sgt, %47, %48 : vector<1x1xi32>
      %50 = arith.extui %49 : vector<1x1xi1> to vector<1x1xi32>
      %51 = arith.sitofp %50 : vector<1x1xi32> to vector<1x1xf32>
      %c0_i32_27 = arith.constant 0 : i32
      %52 = vector.broadcast %c0_i32_27 : i32 to vector<1x4xi32>
      %53 = arith.cmpi eq, %37, %52 : vector<1x4xi32>
      %cst_28 = arith.constant 0.000000e+00 : f32
      %54 = vector.shape_cast %51 : vector<1x1xf32> to vector<1x1xf32>
      %55 = vector.broadcast %54 : vector<1x1xf32> to vector<1x4xf32>
      %56 = vector.broadcast %cst_28 : f32 to vector<1x4xf32>
      %57 = arith.select %53, %55, %56 : vector<1x4xi1>, vector<1x4xf32>
      %58 = arith.addf %38, %57 : vector<1x4xf32>
      %59 = vector.shape_cast %28 : vector<1x2x128xi32> to vector<2x128xi32>
      %c1_i32_29 = arith.constant 1 : i32
      %60 = vector.broadcast %c1_i32_29 : i32 to vector<2x128xi32>
      %61 = arith.shrsi %59, %60 : vector<2x128xi32>
      %c1_i32_30 = arith.constant 1 : i32
      %62 = vector.broadcast %c1_i32_30 : i32 to vector<2x128xi32>
      %63 = arith.andi %61, %62 : vector<2x128xi32>
      %cst_31 = arith.constant dense<-2147483648> : vector<2xi32>
      %64 = vector.multi_reduction <maxsi>, %63, %cst_31 [1] : vector<2x128xi32> to vector<2xi32>
      %65 = vector.shape_cast %64 : vector<2xi32> to vector<2x1xi32>
      %cst_32 = arith.constant dense<-2147483648> : vector<1xi32>
      %66 = vector.multi_reduction <maxsi>, %65, %cst_32 [0] : vector<2x1xi32> to vector<1xi32>
      %67 = vector.shape_cast %66 : vector<1xi32> to vector<1x1xi32>
      %c0_i32_33 = arith.constant 0 : i32
      %68 = vector.broadcast %c0_i32_33 : i32 to vector<1x1xi32>
      %69 = arith.cmpi sgt, %67, %68 : vector<1x1xi32>
      %70 = arith.extui %69 : vector<1x1xi1> to vector<1x1xi32>
      %71 = arith.sitofp %70 : vector<1x1xi32> to vector<1x1xf32>
      %c1_i32_34 = arith.constant 1 : i32
      %72 = vector.broadcast %c1_i32_34 : i32 to vector<1x4xi32>
      %73 = arith.cmpi eq, %37, %72 : vector<1x4xi32>
      %cst_35 = arith.constant 0.000000e+00 : f32
      %74 = vector.shape_cast %71 : vector<1x1xf32> to vector<1x1xf32>
      %75 = vector.broadcast %74 : vector<1x1xf32> to vector<1x4xf32>
      %76 = vector.broadcast %cst_35 : f32 to vector<1x4xf32>
      %77 = arith.select %73, %75, %76 : vector<1x4xi1>, vector<1x4xf32>
      %78 = arith.addf %58, %77 : vector<1x4xf32>
      %79 = vector.shape_cast %28 : vector<1x2x128xi32> to vector<2x128xi32>
      %c2_i32 = arith.constant 2 : i32
      %80 = vector.broadcast %c2_i32 : i32 to vector<2x128xi32>
      %81 = arith.shrsi %79, %80 : vector<2x128xi32>
      %c1_i32_36 = arith.constant 1 : i32
      %82 = vector.broadcast %c1_i32_36 : i32 to vector<2x128xi32>
      %83 = arith.andi %81, %82 : vector<2x128xi32>
      %cst_37 = arith.constant dense<-2147483648> : vector<2xi32>
      %84 = vector.multi_reduction <maxsi>, %83, %cst_37 [1] : vector<2x128xi32> to vector<2xi32>
      %85 = vector.shape_cast %84 : vector<2xi32> to vector<2x1xi32>
      %cst_38 = arith.constant dense<-2147483648> : vector<1xi32>
      %86 = vector.multi_reduction <maxsi>, %85, %cst_38 [0] : vector<2x1xi32> to vector<1xi32>
      %87 = vector.shape_cast %86 : vector<1xi32> to vector<1x1xi32>
      %c0_i32_39 = arith.constant 0 : i32
      %88 = vector.broadcast %c0_i32_39 : i32 to vector<1x1xi32>
      %89 = arith.cmpi sgt, %87, %88 : vector<1x1xi32>
      %90 = arith.extui %89 : vector<1x1xi1> to vector<1x1xi32>
      %91 = arith.sitofp %90 : vector<1x1xi32> to vector<1x1xf32>
      %c2_i32_40 = arith.constant 2 : i32
      %92 = vector.broadcast %c2_i32_40 : i32 to vector<1x4xi32>
      %93 = arith.cmpi eq, %37, %92 : vector<1x4xi32>
      %cst_41 = arith.constant 0.000000e+00 : f32
      %94 = vector.shape_cast %91 : vector<1x1xf32> to vector<1x1xf32>
      %95 = vector.broadcast %94 : vector<1x1xf32> to vector<1x4xf32>
      %96 = vector.broadcast %cst_41 : f32 to vector<1x4xf32>
      %97 = arith.select %93, %95, %96 : vector<1x4xi1>, vector<1x4xf32>
      %98 = arith.addf %78, %97 : vector<1x4xf32>
      %99 = vector.shape_cast %28 : vector<1x2x128xi32> to vector<2x128xi32>
      %c3_i32 = arith.constant 3 : i32
      %100 = vector.broadcast %c3_i32 : i32 to vector<2x128xi32>
      %101 = arith.shrsi %99, %100 : vector<2x128xi32>
      %c1_i32_42 = arith.constant 1 : i32
      %102 = vector.broadcast %c1_i32_42 : i32 to vector<2x128xi32>
      %103 = arith.andi %101, %102 : vector<2x128xi32>
      %cst_43 = arith.constant dense<-2147483648> : vector<2xi32>
      %104 = vector.multi_reduction <maxsi>, %103, %cst_43 [1] : vector<2x128xi32> to vector<2xi32>
      %105 = vector.shape_cast %104 : vector<2xi32> to vector<2x1xi32>
      %cst_44 = arith.constant dense<-2147483648> : vector<1xi32>
      %106 = vector.multi_reduction <maxsi>, %105, %cst_44 [0] : vector<2x1xi32> to vector<1xi32>
      %107 = vector.shape_cast %106 : vector<1xi32> to vector<1x1xi32>
      %c0_i32_45 = arith.constant 0 : i32
      %108 = vector.broadcast %c0_i32_45 : i32 to vector<1x1xi32>
      %109 = arith.cmpi sgt, %107, %108 : vector<1x1xi32>
      %110 = arith.extui %109 : vector<1x1xi1> to vector<1x1xi32>
      %111 = arith.sitofp %110 : vector<1x1xi32> to vector<1x1xf32>
      %c3_i32_46 = arith.constant 3 : i32
      %112 = vector.broadcast %c3_i32_46 : i32 to vector<1x4xi32>
      %113 = arith.cmpi eq, %37, %112 : vector<1x4xi32>
      %cst_47 = arith.constant 0.000000e+00 : f32
      %114 = vector.shape_cast %111 : vector<1x1xf32> to vector<1x1xf32>
      %115 = vector.broadcast %114 : vector<1x1xf32> to vector<1x4xf32>
      %116 = vector.broadcast %cst_47 : f32 to vector<1x4xf32>
      %117 = arith.select %113, %115, %116 : vector<1x4xi1>, vector<1x4xf32>
      %118 = arith.addf %98, %117 : vector<1x4xf32>
      %119 = math.absf %36 : vector<1x4xf32>
      %cst_48 = arith.constant 0.000000e+00 : f32
      %120 = vector.broadcast %cst_48 : f32 to vector<1x4xf32>
      %121 = arith.subf %120, %119 : vector<1x4xf32>
      %122 = math.exp %121 : vector<1x4xf32>
      %cst_49 = arith.constant 2.000000e+01 : f32
      %123 = vector.broadcast %cst_49 : f32 to vector<1x4xf32>
      %124 = arith.cmpf ogt, %119, %123 : vector<1x4xf32>
      %cst_50 = arith.constant 1.000000e+00 : f32
      %125 = vector.broadcast %cst_50 : f32 to vector<1x4xf32>
      %126 = arith.addf %125, %122 : vector<1x4xf32>
      %127 = math.log %126 : vector<1x4xf32>
      %128 = arith.select %124, %122, %127 : vector<1x4xi1>, vector<1x4xf32>
      %cst_51 = arith.constant 0.000000e+00 : f32
      %129 = vector.broadcast %cst_51 : f32 to vector<1x4xf32>
      %130 = arith.maximumf %36, %129 : vector<1x4xf32>
      %131 = arith.mulf %36, %118 : vector<1x4xf32>
      %132 = arith.subf %130, %131 : vector<1x4xf32>
      %133 = arith.addf %132, %128 : vector<1x4xf32>
      %cst_52 = arith.constant dense<0.000000e+00> : vector<1xf32>
      %134 = vector.multi_reduction <add>, %133, %cst_52 [1] : vector<1x4xf32> to vector<1xf32>
      %135 = vector.shape_cast %134 : vector<1xf32> to vector<1x1xf32>
      %136 = vector.shape_cast %135 : vector<1x1xf32> to vector<1x1x1xf32>
      %c0_53 = arith.constant 0 : index
      %c0_54 = arith.constant 0 : index
      %c0_55 = arith.constant 0 : index
      %137 = vector.load %arg4[%c0_53, %c0_54, %c0_55] : memref<1x1x1xf32, #tpu.memory_space<vmem>>, vector<1x1x1xf32>
      tpu.vector_store %arg4[%c0_53, %c0_54, %c0_55], %136 {strides = array<i32>} : memref<1x1x1xf32, #tpu.memory_space<vmem>>, vector<1x1x1xf32>,
    } else {
    }
    return
  }
  func.func @transform_0(%arg0: i32, %arg1: i32) -> (i32, i32) {
    %c0_i32 = arith.constant 0 : i32
    %c0_i32_0 = arith.constant 0 : i32
    %c0_i32_1 = arith.constant 0 : i32
    return %c0_i32, %c0_i32_0 : i32, i32
  }
  func.func @transform_1(%arg0: i32, %arg1: i32) -> (i32, i32, i32, i32) {
    %c0_i32 = arith.constant 0 : i32
    %c0_i32_0 = arith.constant 0 : i32
    %c0_i32_1 = arith.constant 0 : i32
    return %arg0, %arg1, %c0_i32, %c0_i32_0 : i32, i32, i32, i32
  }
  func.func @transform_2(%arg0: i32, %arg1: i32) -> (i32, i32, i32) {
    %c0_i32 = arith.constant 0 : i32
    %c0_i32_0 = arith.constant 0 : i32
    %c0_i32_1 = arith.constant 0 : i32
    return %arg0, %c0_i32, %c0_i32_0 : i32, i32, i32
  }
}

</mosaic_0001>

<bundles_post_ra>
// kernel: tpu_custom_call.1
= control target key start
LH: loop header
LB: loop body
LE: loop exit
PB: predicated region body
PF: predicated region fallthrough
CT: control target
= control target key end

     0   :  { %7 = vsyncpa [#allocation4], 0  ;;  %s556_s9 = smov 0   ;;  %s558_s10 = smov 0   ;;  %s659_s0 = inlined_call_operand.hbm [shape: f32[2,4], index: 0, kind: input, shape index: {}]   ;;  %s660_s1 = inlined_call_operand.vmem [shape: s8[2,1,2,128], index: 1, kind: input, shape index: {}]   ;;  %s661_s2 = inlined_call_operand.vmem [shape: f32[2,1,1], index: 2, kind: output, shape index: {}]  }
   0x1   :  { %s560_s11 = smov 0  }
   0x2 LB: > { %s426_s12 = sadd.s32 4294967295, %s535_s11   ;;  %s25_s13 = sadd.s32 1, %s531_s10  ;;  %s535_s11 = sphi %s560_s11, %s13_s11   ;;  %s531_s10 = sphi %s558_s10, %s671_s10   ;;  %s527_s9 = sphi %s556_s9, %s670_s9  }
   0x3   : > { %p27_p0 = scmp.ge.s32.totalorder %s25_s13, 2  ;;  %p428_p1 = scmp.ge.s32.totalorder %s535_s11, 1 }
   0x4   : > { %p105_p2 = scmp.lt.s32.totalorder %s535_s11, 3  ;;  %p581_p4 = scmp.eq.s32.totalorder %s426_s12, 0 }
   0x5   : > { %s673_s13 = smov (%p27_p0, %s25_s13), 0  ;;  %s537_s16 = smov [#allocation3]  }
   0x6   : > { %p577_p3 = pnand %p428_p1, %p105_p2  ;;  %s118_s17 = sshll.u32 %s537_s16, 4  ;;  %s119_s17 = int_to_ptr.vmem [resolvable:$true] %s118_s17 }
   0x7   : > { %s666_s15 = scalar_select %p581_p4, 1, 0 }
   0x8   : > { %s665_s14 = scalar_select %p577_p3, 1, 0 }
   0x9   : > { %p443_p5 = pneg %p577_p3  ;;  %s481_s21 = scalar_lea.hbm %s659_s0, 32 }
   0xa   : > { %p482_p7 = scmp.ne.s32.totalorder %s659_s0, %s481_s21  ;;  %p488_p11 = scmp.lt.u32.totalorder %s481_s21, %s659_s0 }
   0xb   : > { %p589_p6 = pnand %p581_p4, %p443_p5 }
   0xd   : > { %p483_p8 = pneg %p589_p6 }
   0xf   : > { %p484_p9 = pnand %p483_p8, %p482_p7 }
  0x11   : > { %p485_p10 = pneg %p484_p9 }
  0x13   : > { %p490_p12 = pnand %p488_p11, %p485_p10 }
  0x15   : > { %493 = shalt.err (!%p490_p12)
}
  0x16   : > { %s494_s26 = scalar_lea.vmem %s119_s17, 32  ;;  %p502_p2 = scmp.lt.s32.totalorder %s119_s17, %s119_s17 }
  0x17   : > { %p495_p13 = scmp.ne.s32.totalorder %s119_s17, %s494_s26  ;;  %p503_p5 = scmp.lt.s32.totalorder %s494_s26, %s494_s26 }
  0x19   : > { %p497_p0 = pnand %p495_p13, %p483_p8  ;;  %p504_p4 = por %p503_p5, %p502_p2 }
  0x1b   : > { %p498_p1 = pneg %p497_p0 }
  0x1d   : > { %p505_p3 = pnand %p504_p4, %p498_p1 }
  0x1f   : > { %508 = shalt.err (!%p505_p3)
}
  0x20   : > { %446 = dma.hbm_to_vmem [thread:$0]  (!%p589_p6), %s659_s0, 32, %s119_s17, [#allocation4]  }
  0x21   : > { %p668_p7 = scmp.ne.s32.totalorder %s665_s14, 0 }
  0x22   : > { %p669_p9 = scmp.ne.s32.totalorder (!%p668_p7), %s666_s15, 0 }
  0x23   : > { %140 = sbr.rel (%p668_p7) target bundleno = 542 (0x21e), region = 28 }
  0x2a   : > { %522 = dma.done.wait (%p669_p9), [#allocation4], 32  }
  0x2b   : > { %524 = vsyncadd (%p669_p9), [#allocation4], 4294967264  ;;  %p161_p8 = scmp.lt.s32.totalorder %s527_s9, 1  ;;  %v538_v0 = vmov 0   ;;  %v539_v5 = vmov 1   ;;  %vm208_vm3 = vcmask 1041408   ;;  %v192_v46 = vlaneseq }
  0x2c   : > { %174 = vst [vmem:[#allocation2] sm:$0x3] %v538_v0  ;;  %v194_v48 = vstv %s527_s9  ;;  %v191_v49 = vld [vmem:[#allocation3] sm:$0x3]  ;;  %vm197_vm9 = vcmask 25600  }
  0x2d   : > { %s617_s29 = scalar_select %p161_p8, %s527_s9, 1  ;;  %v193_v47 = vshrl.u32 %v192_v46, 7 }
  0x2f   : > { %s166_s4 = scalar_lea.vmem %s660_s1, %s617_s29  ;;  %vm195_vm8 = vcmp.eq.s32.totalorder %v193_v47, %v194_v48  ;;  %s169_s7 = scalar_lea.vmem %s661_s2, %s617_s29 }
  0x30   : > { %v175_v1 = vld [vmem:[%s166_s4] sm:$0x1]  ;;  %v196_v50 = vsel %vm195_vm8, %v191_v49, 0.0 }
  0x31   : > { %v176_v2 = vunpack.c.0.s8 %v175_v1  ;;  %v198_v51 = vsel %vm197_vm9, %v196_v50, 0.0 }
  0x32   : > { %v199_v52 = vrot.slane %v198_v51, 4 }
  0x33   : > { %vm177_vm0 = vcmp.ge.s32.totalorder %v176_v2, 0  ;;  %vm178_vm1 = vcmp.lt.s32.totalorder %v176_v2, 4  ;;  %v183_v7 = vld [vmem:[#allocation2] sm:$0x3] }
  0x34   : > { %vm179_vm2 = vmand %vm177_vm0, %vm178_vm1  ;;  %v200_v53 = vadd.f32 %v199_v52, %v198_v51 }
  0x35   : > { %v180_v3 = vsel %vm179_vm2, %v176_v2, 0 }
  0x36   : > { %v181_v4 = vand.u32 31, %v180_v3  ;;  %v201_v54 = vrot.slane %v200_v53, 2 }
  0x38   : > { %v182_v6 = vshll.u32 %v539_v5, %v181_v4  ;;  %v202_v55 = vadd.f32 %v201_v54, %v200_v53 }
  0x3a   : > { %v184_v8 = vsel %vm179_vm2, %v182_v6, 0  ;;  %v203_v56 = vrot.slane %v202_v55, 1 }
  0x3b   : > { %v185_v9 = vor.u32 %v184_v8, %v183_v7 }
  0x3c   : > { %v628_v57 = vadd.f32 %v203_v56, %v202_v55 }
  0x3d   : > { %186 = vst [vmem:[#allocation2] sm:$0x3] %v185_v9 }
  0x3e   : > { %v339_v58 = vand.u32 2147483647, %v628_v57 }
  0x40   : > { %v340_v59 = vsub.f32 0.0, %v339_v58 }
  0x42   : > { %v341_v60 = vmul.f32 1.442695, %v340_v59 }
  0x44   : > { %v190_v10 = vld [vmem:[#allocation2] sm:$0x3]  ;;  %477 = vpow2.f32 %v341_v60 }
  0x45   : > { %v207_v11 = vand.u32 1, %v190_v10  ;;  %v273_v12 = vshra.s32 %v190_v10, 2  ;;  %v240_v13 = vshra.s32 %v190_v10, 1  ;;  %v306_v14 = vshra.s32 %v190_v10, 3 }
  0x47   : > { %v209_v15 = vsel %vm208_vm3, %v207_v11, 2147483648  ;;  %v274_v16 = vand.u32 1, %v273_v12  ;;  %v241_v17 = vand.u32 1, %v240_v13  ;;  %v307_v18 = vand.u32 1, %v306_v14 }
  0x48   : > { %v211_v19 = vshra.s32 %v209_v15, 16  ;;  %v210_v30 = vand.u32 65535, %v209_v15 }
  0x49   : > { %v275_v20 = vsel %vm208_vm3, %v274_v16, 2147483648  ;;  %v242_v21 = vsel %vm208_vm3, %v241_v17, 2147483648  ;;  %v308_v22 = vsel %vm208_vm3, %v307_v18, 2147483648 }
  0x4a   : > { %v213_v23 = vcvt.s32.f32 %v211_v19  ;;  %v277_v24 = vshra.s32 %v275_v20, 16  ;;  %v244_v25 = vshra.s32 %v242_v21, 16  ;;  %v310_v26 = vshra.s32 %v308_v22, 16 }
  0x4b   : > { %v276_v31 = vand.u32 65535, %v275_v20  ;;  %v212_v32 = vcvt.s32.f32 %v210_v30  ;;  %v243_v33 = vand.u32 65535, %v242_v21  ;;  %v309_v36 = vand.u32 65535, %v308_v22 }
  0x4c   : > { %214 = vmax.xlane.f32.xlu0 %v213_v23  ;;  %v279_v27 = vcvt.s32.f32 %v277_v24  ;;  %v246_v28 = vcvt.s32.f32 %v244_v25  ;;  %v312_v29 = vcvt.s32.f32 %v310_v26 }
  0x4d   : > { %v278_v35 = vcvt.s32.f32 %v276_v31  ;;  %v245_v39 = vcvt.s32.f32 %v243_v33  ;;  %v311_v42 = vcvt.s32.f32 %v309_v36 }
  0x4e   : > { %280 = vmax.xlane.f32.xlu1 %v279_v27  ;;  %v634_v15 = vpop.eup %477 }
  0x4f   : > { %v344_v26 = vadd.f32 1.0, %v634_v15 }
  0x50   : > { %247 = vmax.xlane.f32.xlu0 %v246_v28 }
  0x51   : > { %479 = vlog2.f32 %v344_v26 }
  0x52   : > { %313 = vmax.xlane.f32.xlu1 %v312_v29 }
  0x5b   : > { %v480_v53 = vpop.eup %479 }
  0xd9   : > { %v215_v34 = vpop.xlane.xlu0 %214 }
  0xda   : > { %vm216_vm4 = vcmp.eq.f32.partialorder %v213_v23, %v215_v34  ;;  %v221_v61 = vcvt.f32.s32 %v215_v34 }
  0xdb   : > { %v217_v37 = vsel %vm216_vm4, %v212_v32, -inf  ;;  %v281_v38 = vpop.xlane.xlu1 %280 }
  0xdc   : > { %218 = vmax.xlane.f32.xlu0 %v217_v37  ;;  %vm282_vm5 = vcmp.eq.f32.partialorder %v279_v27, %v281_v38  ;;  %v287_v62 = vcvt.f32.s32 %v281_v38  ;;  %v222_v0 = vshll.u32 %v221_v61, 16 }
  0xdd   : > { %v248_v40 = vpop.xlane.xlu0 %247  ;;  %v283_v41 = vsel %vm282_vm5, %v278_v35, -inf  ;;  %v206_v35 = vand.u32 127, %v192_v46 }
  0xde   : > { %vm249_vm6 = vcmp.eq.f32.partialorder %v246_v28, %v248_v40  ;;  %v254_v1 = vcvt.f32.s32 %v248_v40  ;;  %v288_v4 = vshll.u32 %v287_v62, 16  ;;  %v346_v62 = vmul.f32 0.6931472, %v480_v53 }
  0xdf   : > { %v250_v43 = vsel %vm249_vm6, %v245_v39, -inf  ;;  %v314_v44 = vpop.xlane.xlu1 %313  ;;  %vm237_vm4 = vcmp.eq.s32.totalorder %v206_v35, 0 }
  0xe0   : > { %251 = vmax.xlane.f32.xlu1 %v250_v43  ;;  %284 = vmax.xlane.f32.xlu0 %v283_v41  ;;  %vm315_vm7 = vcmp.eq.f32.partialorder %v312_v29, %v314_v44  ;;  %v320_v5 = vcvt.f32.s32 %v314_v44  ;;  %v255_v8 = vshll.u32 %v254_v1, 16  ;;  %v540_v43 = vmov 0.0  }
  0xe1   : > { %v316_v45 = vsel %vm315_vm7, %v311_v42, -inf  ;;  %vm270_vm7 = vcmp.eq.s32.totalorder %v206_v35, 1 }
  0xe2   : > { %v321_v16 = vshll.u32 %v320_v5, 16 }
  0xe4   : > { %317 = vmax.xlane.f32.xlu1 %v316_v45 }
 0x169   : > { %v219_v63 = vpop.xlane.xlu0 %218 }
 0x16a   : > { %v220_v2 = vcvt.f32.s32 %v219_v63 }
 0x16c   : > { %v223_v3 = vadd.s32 %v222_v0, %v220_v2  ;;  %v348_v0 = vmax.f32 %v628_v57, 0.0 }
 0x16d   : > { %v252_v6 = vpop.xlane.xlu1 %251  ;;  %v285_v7 = vpop.xlane.xlu0 %284 }
 0x16e   : > { %v224_v9 = vsel %vm208_vm3, %v223_v3, 2147483648  ;;  %v253_v10 = vcvt.f32.s32 %v252_v6  ;;  %v286_v11 = vcvt.f32.s32 %v285_v7 }
 0x16f   : > { %v225_v12 = vrot.slane %v224_v9, 4 }
 0x170   : > { %v256_v13 = vadd.s32 %v255_v8, %v253_v10  ;;  %v289_v14 = vadd.s32 %v288_v4, %v286_v11 }
 0x171   : > { %vm226_vm10 = vcmp.gt.s32.totalorder %v224_v9, %v225_v12  ;;  %v318_v17 = vpop.xlane.xlu1 %317 }
 0x172   : > { %v227_v18 = vsel %vm226_vm10, %v224_v9, %v225_v12  ;;  %v257_v19 = vsel %vm208_vm3, %v256_v13, 2147483648  ;;  %v290_v20 = vsel %vm208_vm3, %v289_v14, 2147483648  ;;  %v319_v21 = vcvt.f32.s32 %v318_v17 }
 0x173   : > { %v228_v22 = vrot.slane %v227_v18, 2  ;;  %v258_v23 = vrot.slane %v257_v19, 4  ;;  %v291_v24 = vrot.slane %v290_v20, 4  ;;  %vm303_vm10 = vcmp.eq.s32.totalorder %v206_v35, 2 }
 0x174   : > { %v322_v25 = vadd.s32 %v321_v16, %v319_v21 }
 0x175   : > { %vm229_vm11 = vcmp.gt.s32.totalorder %v227_v18, %v228_v22  ;;  %vm259_vm12 = vcmp.gt.s32.totalorder %v257_v19, %v258_v23  ;;  %vm292_vm13 = vcmp.gt.s32.totalorder %v290_v20, %v291_v24 }
 0x176   : > { %v230_v27 = vsel %vm229_vm11, %v227_v18, %v228_v22  ;;  %v260_v28 = vsel %vm259_vm12, %v257_v19, %v258_v23  ;;  %v293_v29 = vsel %vm292_vm13, %v290_v20, %v291_v24  ;;  %v323_v30 = vsel %vm208_vm3, %v322_v25, 2147483648 }
 0x177   : > { %v231_v31 = vrot.slane %v230_v27, 1  ;;  %v261_v32 = vrot.slane %v260_v28, 2  ;;  %v294_v33 = vrot.slane %v293_v29, 2  ;;  %v324_v34 = vrot.slane %v323_v30, 4 }
 0x178   : > { %vm336_vm12 = vcmp.eq.s32.totalorder %v206_v35, 3 }
 0x179   : > { %vm232_vm14 = vcmp.gt.s32.totalorder %v230_v27, %v231_v31  ;;  %vm262_vm15 = vcmp.gt.s32.totalorder %v260_v28, %v261_v32  ;;  %vm295_vm0 = vcmp.gt.s32.totalorder %v293_v29, %v294_v33  ;;  %vm325_vm1 = vcmp.gt.s32.totalorder %v323_v30, %v324_v34 }
 0x17a   : > { %v233_v36 = vsel %vm232_vm14, %v230_v27, %v231_v31  ;;  %v263_v37 = vsel %vm262_vm15, %v260_v28, %v261_v32  ;;  %v296_v38 = vsel %vm295_vm0, %v293_v29, %v294_v33  ;;  %v326_v39 = vsel %vm325_vm1, %v323_v30, %v324_v34 }
 0x17b   : > { %vm234_vm2 = vcmp.gt.s32.totalorder %v233_v36, 0  ;;  %v264_v40 = vrot.slane %v263_v37, 1  ;;  %v297_v41 = vrot.slane %v296_v38, 1  ;;  %v327_v42 = vrot.slane %v326_v39, 2 }
 0x17c   : > { %v433_v44 = vsel %vm234_vm2, 1.0, %v540_v43  ;;  %vm343_vm14 = vcmp.gt.f32.partialorder %v339_v58, 20.0  ;;  %vm352_vm15 = vcmask 31744   ;;  %vm356_vm0 = vcmask 0  }
 0x17d   : > { %vm265_vm3 = vcmp.gt.s32.totalorder %v263_v37, %v264_v40  ;;  %vm298_vm5 = vcmp.gt.s32.totalorder %v296_v38, %v297_v41  ;;  %vm328_vm6 = vcmp.gt.s32.totalorder %v326_v39, %v327_v42  ;;  %v238_v51 = vsel %vm237_vm4, %v433_v44, 0.0 }
 0x17e   : > { %v266_v45 = vsel %vm265_vm3, %v263_v37, %v264_v40  ;;  %v299_v46 = vsel %vm298_vm5, %v296_v38, %v297_v41  ;;  %v329_v47 = vsel %vm328_vm6, %v326_v39, %v327_v42  ;;  %v347_v2 = vsel %vm343_vm14, %v634_v15, %v346_v62 }
 0x17f   : > { %vm267_vm8 = vcmp.gt.s32.totalorder %v266_v45, 0  ;;  %vm300_vm9 = vcmp.gt.s32.totalorder %v299_v46, 0  ;;  %v330_v48 = vrot.slane %v329_v47, 1 }
 0x180   : > { %v434_v49 = vsel %vm267_vm8, 1.0, %v540_v43  ;;  %v435_v50 = vsel %vm300_vm9, 1.0, %v540_v43 }
 0x181   : > { %vm331_vm11 = vcmp.gt.s32.totalorder %v329_v47, %v330_v48  ;;  %v271_v52 = vsel %vm270_vm7, %v434_v49, 0.0  ;;  %v304_v56 = vsel %vm303_vm10, %v435_v50, 0.0 }
 0x182   : > { %v332_v54 = vsel %vm331_vm11, %v329_v47, %v330_v48  ;;  %v272_v55 = vadd.f32 %v271_v52, %v238_v51 }
 0x183   : > { %vm333_vm13 = vcmp.gt.s32.totalorder %v332_v54, 0 }
 0x184   : > { %v305_v59 = vadd.f32 %v304_v56, %v272_v55  ;;  %v436_v60 = vsel %vm333_vm13, 1.0, %v540_v43 }
 0x185   : > { %v337_v61 = vsel %vm336_vm12, %v436_v60, 0.0 }
 0x186   : > { %v338_v63 = vadd.f32 %v337_v61, %v305_v59 }
 0x188   : > { %v349_v1 = vmul.f32 %v338_v63, %v628_v57 }
 0x18a   : > { %v350_v3 = vsub.f32 %v348_v0, %v349_v1 }
 0x18c   : > { %v351_v4 = vadd.f32 %v350_v3, %v347_v2 }
 0x18e   : > { %v353_v5 = vsel %vm352_vm15, %v351_v4, 0.0 }
 0x18f   : > { %354 = vadd.xlane.f32.xlu0 %v353_v5 }
 0x21c   : > { %v355_v6 = vpop.xlane.xlu0 %354 }
 0x21d   : > { %357 = vst.msk [vmem:[%s169_s7] sm:$0x1] %vm356_vm0, %v355_v6 }
 0x21e PF: > { %s13_s11 = sadd.s32 1, %s535_s11   ;;  %s670_s9 = smov %s531_s10 }
 0x21f   : > { %p10_p3 = scmp.ge.s32.totalorder %s13_s11, 4   ;;  %s671_s10 = smov %s673_s13 }
 0x221   :  { %12 = sbr.rel (!%p10_p3) target bundleno = 2 (0x2), region = 71 }
 0x228   :  { %375 = vsyncpa [#allocation4], 1 }
 0x229   :  { %377 = vsyncpa [#allocation4 + $0x1], 1 }

</bundles_post_ra>
